<compile_context>
chip_gen: v7x
topology: tpu7x:2x2x1
jax: 0.10.0
libtpu: 0.0.40
codegen_flags: <defaults>
</compile_context>

<pallas_src>
import functools

import jax
import jax.numpy as jnp
from jax.experimental import pallas as pl
from jax.experimental.pallas import tpu as pltpu

LANE = 128      # vreg lane width (last dim)
SUBLANE = 8     # vreg sublane width (second-to-last dim)


def _round_up(x: int, m: int) -> int:
    return ((x + m - 1) // m) * m


def _num_tensorcores() -> int:
    """Best-effort TensorCore count (2 on v7x, 1 on v5e/v6e); safe fallback."""
    try:
        info = pltpu.get_tpu_info()
        for attr in ("num_cores", "num_tensorcores", "tensorcore_count",
                     "cores_per_chip"):
            v = getattr(info, attr, None)
            if isinstance(v, int) and v >= 1:
                return v
    except Exception:
        pass
    return 1


def _pick_batch_tile(batch: int, cap: int, n_cores: int) -> int:
    """Large sublane-aligned batch tile; >= n_cores tiles when batch allows."""
    cap = max(SUBLANE, _round_up(cap, SUBLANE))
    tm = min(cap, _round_up(batch, SUBLANE))
    if n_cores > 1:
        per_core = max(SUBLANE, _round_up(pl.cdiv(batch, n_cores), SUBLANE))
        tm = min(tm, per_core)
    return max(SUBLANE, _round_up(tm, SUBLANE))


def fused_mlp_kernel(*refs, n_layers: int):
    """refs = (x_ref, w1_ref, b1_ref, ..., wn_ref, bn_ref, o_ref).

    Computes sigmoid(x@W1+b1) -> ... -> sigmoid(@W_{n-1}+b_{n-1}) -> @Wn+bn
    entirely in VMEM/vregs.  Matmuls accumulate in f32 on the MXU; bias add
    and sigmoid stay f32 (EUP/VPU-safe on v5e).
    """
    x_ref = refs[0]
    o_ref = refs[-1]

    h = x_ref[...]
    for i in range(n_layers):
        w_ref = refs[1 + 2 * i]
        b_ref = refs[2 + 2 * i]
        z = jnp.dot(h.astype(w_ref.dtype), w_ref[...],
                    preferred_element_type=jnp.float32)
        z = z + b_ref[...]                       # (1, Np) f32 bias broadcast
        if i < n_layers - 1:
            z = jax.nn.sigmoid(z)                # hidden layers only
        h = z
    o_ref[...] = h.astype(o_ref.dtype)


def _pad_params(params, compute_dtype):
    """Pad feature dims to 128 lanes (done ONCE at init, not per forward).

    Layer 0 keeps its true fan_in (x is fed unpadded); all output dims and
    subsequent fan_ins are padded to 128.  Zero padding preserves semantics:
    padded hidden features become sigmoid(0)=0.5 but multiply all-zero rows of
    the next padded weight matrix, contributing nothing; padded output columns
    are sliced off in the wrapper.
    """
    padded = []
    for idx, (w, b) in enumerate(params):
        fi, fo = w.shape
        fip = fi if idx == 0 else _round_up(fi, LANE)
        fop = _round_up(fo, LANE)
        wp = jnp.zeros((fip, fop), compute_dtype).at[:fi, :fo].set(
            w.astype(compute_dtype))
        bp = jnp.zeros((1, fop), jnp.float32).at[0, :fo].set(
            b.astype(jnp.float32))
        padded.append((wp, bp))
    return padded


@functools.partial(jax.jit, static_argnames=("n_out", "tm"))
def _fused_forward(x, flat_params, *, n_out, tm):
    """jit-compiled: single pallas_call + fused output slice."""
    B, K = x.shape
    n_layers = len(flat_params) // 2
    np_pad = flat_params[-1].shape[-1]           # padded logit width (>=128)

    # Whole params resident in VMEM: no blocking, no double-buffering.
    param_specs = [pl.BlockSpec(memory_space=pltpu.MemorySpace.VMEM)
                   for _ in flat_params]

    out_padded = pl.pallas_call(
        functools.partial(fused_mlp_kernel, n_layers=n_layers),
        out_shape=jax.ShapeDtypeStruct((B, np_pad), jnp.float32),
        grid_spec=pltpu.PrefetchScalarGridSpec(
            num_scalar_prefetch=0,
            grid=(pl.cdiv(B, tm),),
            # x block: true K as last dim (== full array dim -> legal);
            # ragged final batch block is masked by Pallas on store.
            in_specs=[pl.BlockSpec((tm, K), lambda i: (i, 0))] + param_specs,
            # 128-lane-dense output store; sliced back to n_out below (fused).
            out_specs=pl.BlockSpec((tm, np_pad), lambda i: (i, 0)),
        ),
        compiler_params=pltpu.CompilerParams(
            dimension_semantics=("parallel",),
        ),
    )(x, *flat_params)

    return out_padded[:, :n_out]


class MNISTNetPallas:
    """Fused Pallas forward for MNISTNet.  Pads parameters once at init."""

    def __init__(self, params, *, compute_dtype=jnp.float32, tm_cap=1024):
        self.n_out = int(params[-1][0].shape[1])
        self.tm_cap = int(tm_cap)
        flat = []
        for wp, bp in _pad_params(params, compute_dtype):
            flat += [wp, bp]
        self.flat_params = tuple(flat)           # cached, padded, on-device
        self._n_cores = _num_tensorcores()

    def __call__(self, x, *, tm=None):
        B = x.shape[0]
        if tm is None:
            tm = _pick_batch_tile(B, self.tm_cap, self._n_cores)
        else:
            tm = max(SUBLANE, _round_up(int(tm), SUBLANE))
        return _fused_forward(x, self.flat_params, n_out=self.n_out, tm=tm)


def init_params(key, layer_sizes):
    """Deterministic PyTorch-Linear-style init: U(-1/sqrt(fan_in), 1/sqrt(fan_in)).

    Weights stored already transposed to [fan_in, fan_out] so the kernel
    computes y = x @ W + b (== PyTorch's x @ W^T + b).
    """
    params = []
    for i in range(len(layer_sizes) - 1):
        fan_in, fan_out = layer_sizes[i], layer_sizes[i + 1]
        key, kw, kb = jax.random.split(key, 3)
        bound = 1.0 / float(fan_in) ** 0.5
        w = jax.random.uniform(kw, (fan_in, fan_out), jnp.float32, -bound, bound)
        b = jax.random.uniform(kb, (fan_out,), jnp.float32, -bound, bound)
        params.append((w, b))
    return params


def mnist_net_forward_ref(x, params):
    """Pure-JAX reference for correctness checking."""
    n_layers = len(params)
    for i, (w, b) in enumerate(params):
        x = x @ w + b
        if i < n_layers - 1:
            x = jax.nn.sigmoid(x)
    return x


if __name__ == "__main__":
    # Small MNIST-like MLP: 64 -> 32 -> 32 -> 16.
    layer_sizes = [64, 32, 32, 16]

    key = jax.random.PRNGKey(0)
    key, kx = jax.random.split(key)
    params = init_params(key, layer_sizes)

    net = MNISTNetPallas(params)                 # params padded ONCE here

    # Batch deliberately NOT a multiple of 8 to exercise ragged-block masking.
    batch = 10
    x = jax.random.normal(kx, (batch, layer_sizes[0]), dtype=jnp.float32)

    out = jax.block_until_ready(net(x))
    ref = mnist_net_forward_ref(x, params)
    assert out.shape == (batch, layer_sizes[-1]), out.shape
    assert jnp.allclose(out, ref, atol=1e-5, rtol=1e-5), \
        "Pallas output mismatch vs reference"

    # Second check: multiple batch tiles (grid > 1) with a ragged final tile.
    batch2 = 20
    key, kx2 = jax.random.split(key)
    x2 = jax.random.normal(kx2, (batch2, layer_sizes[0]), dtype=jnp.float32)
    out2 = jax.block_until_ready(net(x2, tm=8))
    ref2 = mnist_net_forward_ref(x2, params)
    assert out2.shape == (batch2, layer_sizes[-1]), out2.shape
    assert jnp.allclose(out2, ref2, atol=1e-5, rtol=1e-5), \
        "Pallas tiled output mismatch vs reference"

    print("KERNEL_OK")
</pallas_src>

<mosaic_0001>
module attributes {stable_mosaic.version = 11 : i64} {
  func.func @fused_mlp_kernel(%arg0: i32, %arg1: memref<16x64xf32, #tpu.memory_space<vmem>>, %arg2: memref<64x128xf32, #tpu.memory_space<vmem>>, %arg3: memref<1x128xf32, #tpu.memory_space<vmem>>, %arg4: memref<128x128xf32, #tpu.memory_space<vmem>>, %arg5: memref<1x128xf32, #tpu.memory_space<vmem>>, %arg6: memref<128x128xf32, #tpu.memory_space<vmem>>, %arg7: memref<1x128xf32, #tpu.memory_space<vmem>>, %arg8: memref<16x128xf32, #tpu.memory_space<vmem>>) attributes {dimension_semantics = [#tpu.dimension_semantics<parallel>], iteration_bounds = array<i64: 1>, scalar_prefetch = 0 : i64, scratch_operands = 0 : i64, tpu.core_type = #tpu.core_type<tc>, window_params = [{transform_indices = @transform_0, window_bounds = array<i64: 16, 64>}, {pipeline_mode = #tpu.pipeline_mode<synchronous>, transform_indices = @transform_1, window_bounds = array<i64: 64, 128>}, {pipeline_mode = #tpu.pipeline_mode<synchronous>, transform_indices = @transform_2, window_bounds = array<i64: 1, 128>}, {pipeline_mode = #tpu.pipeline_mode<synchronous>, transform_indices = @transform_3, window_bounds = array<i64: 128, 128>}, {pipeline_mode = #tpu.pipeline_mode<synchronous>, transform_indices = @transform_4, window_bounds = array<i64: 1, 128>}, {pipeline_mode = #tpu.pipeline_mode<synchronous>, transform_indices = @transform_5, window_bounds = array<i64: 128, 128>}, {pipeline_mode = #tpu.pipeline_mode<synchronous>, transform_indices = @transform_6, window_bounds = array<i64: 1, 128>}, {transform_indices = @transform_7, window_bounds = array<i64: 16, 128>}]} {
    %c0 = arith.constant 0 : index
    %c0_0 = arith.constant 0 : index
    %0 = vector.load %arg1[%c0, %c0_0] : memref<16x64xf32, #tpu.memory_space<vmem>>, vector<16x64xf32>
    %c0_1 = arith.constant 0 : index
    %c0_2 = arith.constant 0 : index
    %1 = vector.load %arg2[%c0_1, %c0_2] : memref<64x128xf32, #tpu.memory_space<vmem>>, vector<64x128xf32>
    %cst = arith.constant dense<0.000000e+00> : vector<16x128xf32>
    %2 = tpu.matmul %0, %1, %cst {dimension_numbers = #tpu.dot_dimension_numbers<[1], [0], [0], [1], [0, 0, 1, 1], [], []>} : vector<16x64xf32>, vector<64x128xf32>, vector<16x128xf32> -> vector<16x128xf32>
    %c0_3 = arith.constant 0 : index
    %c0_4 = arith.constant 0 : index
    %3 = vector.load %arg3[%c0_3, %c0_4] : memref<1x128xf32, #tpu.memory_space<vmem>>, vector<1x128xf32>
    %4 = vector.broadcast %3 : vector<1x128xf32> to vector<16x128xf32>
    %5 = arith.addf %2, %4 : vector<16x128xf32>
    %6 = arith.negf %5 : vector<16x128xf32>
    %7 = math.exp %6 : vector<16x128xf32>
    %cst_5 = arith.constant 1.000000e+00 : f32
    %8 = vector.broadcast %cst_5 : f32 to vector<16x128xf32>
    %9 = arith.addf %8, %7 : vector<16x128xf32>
    %10 = arith.divf %8, %9 : vector<16x128xf32>
    %c0_6 = arith.constant 0 : index
    %c0_7 = arith.constant 0 : index
    %11 = vector.load %arg4[%c0_6, %c0_7] : memref<128x128xf32, #tpu.memory_space<vmem>>, vector<128x128xf32>
    %cst_8 = arith.constant dense<0.000000e+00> : vector<16x128xf32>
    %12 = tpu.matmul %10, %11, %cst_8 {dimension_numbers = #tpu.dot_dimension_numbers<[1], [0], [0], [1], [0, 0, 1, 1], [], []>} : vector<16x128xf32>, vector<128x128xf32>, vector<16x128xf32> -> vector<16x128xf32>
    %c0_9 = arith.constant 0 : index
    %c0_10 = arith.constant 0 : index
    %13 = vector.load %arg5[%c0_9, %c0_10] : memref<1x128xf32, #tpu.memory_space<vmem>>, vector<1x128xf32>
    %14 = vector.broadcast %13 : vector<1x128xf32> to vector<16x128xf32>
    %15 = arith.addf %12, %14 : vector<16x128xf32>
    %16 = arith.negf %15 : vector<16x128xf32>
    %17 = math.exp %16 : vector<16x128xf32>
    %cst_11 = arith.constant 1.000000e+00 : f32
    %18 = vector.broadcast %cst_11 : f32 to vector<16x128xf32>
    %19 = arith.addf %18, %17 : vector<16x128xf32>
    %20 = arith.divf %18, %19 : vector<16x128xf32>
    %c0_12 = arith.constant 0 : index
    %c0_13 = arith.constant 0 : index
    %21 = vector.load %arg6[%c0_12, %c0_13] : memref<128x128xf32, #tpu.memory_space<vmem>>, vector<128x128xf32>
    %cst_14 = arith.constant dense<0.000000e+00> : vector<16x128xf32>
    %22 = tpu.matmul %20, %21, %cst_14 {dimension_numbers = #tpu.dot_dimension_numbers<[1], [0], [0], [1], [0, 0, 1, 1], [], []>} : vector<16x128xf32>, vector<128x128xf32>, vector<16x128xf32> -> vector<16x128xf32>
    %c0_15 = arith.constant 0 : index
    %c0_16 = arith.constant 0 : index
    %23 = vector.load %arg7[%c0_15, %c0_16] : memref<1x128xf32, #tpu.memory_space<vmem>>, vector<1x128xf32>
    %24 = vector.broadcast %23 : vector<1x128xf32> to vector<16x128xf32>
    %25 = arith.addf %22, %24 : vector<16x128xf32>
    %c0_17 = arith.constant 0 : index
    %c0_18 = arith.constant 0 : index
    %26 = vector.load %arg8[%c0_17, %c0_18] : memref<16x128xf32, #tpu.memory_space<vmem>>, vector<16x128xf32>
    tpu.vector_store %arg8[%c0_17, %c0_18], %25 {strides = array<i32>} : memref<16x128xf32, #tpu.memory_space<vmem>>, vector<16x128xf32>,
    return
  }
  func.func @transform_0(%arg0: i32) -> (i32, i32) {
    %c0_i32 = arith.constant 0 : i32
    %c0_i32_0 = arith.constant 0 : i32
    return %arg0, %c0_i32 : i32, i32
  }
  func.func @transform_1(%arg0: i32) -> (i32, i32) {
    %c0_i32 = arith.constant 0 : i32
    %c0_i32_0 = arith.constant 0 : i32
    %c0_i32_1 = arith.constant 0 : i32
    return %c0_i32, %c0_i32_0 : i32, i32
  }
  func.func @transform_2(%arg0: i32) -> (i32, i32) {
    %c0_i32 = arith.constant 0 : i32
    %c0_i32_0 = arith.constant 0 : i32
    %c0_i32_1 = arith.constant 0 : i32
    return %c0_i32, %c0_i32_0 : i32, i32
  }
  func.func @transform_3(%arg0: i32) -> (i32, i32) {
    %c0_i32 = arith.constant 0 : i32
    %c0_i32_0 = arith.constant 0 : i32
    %c0_i32_1 = arith.constant 0 : i32
    return %c0_i32, %c0_i32_0 : i32, i32
  }
  func.func @transform_4(%arg0: i32) -> (i32, i32) {
    %c0_i32 = arith.constant 0 : i32
    %c0_i32_0 = arith.constant 0 : i32
    %c0_i32_1 = arith.constant 0 : i32
    return %c0_i32, %c0_i32_0 : i32, i32
  }
  func.func @transform_5(%arg0: i32) -> (i32, i32) {
    %c0_i32 = arith.constant 0 : i32
    %c0_i32_0 = arith.constant 0 : i32
    %c0_i32_1 = arith.constant 0 : i32
    return %c0_i32, %c0_i32_0 : i32, i32
  }
  func.func @transform_6(%arg0: i32) -> (i32, i32) {
    %c0_i32 = arith.constant 0 : i32
    %c0_i32_0 = arith.constant 0 : i32
    %c0_i32_1 = arith.constant 0 : i32
    return %c0_i32, %c0_i32_0 : i32, i32
  }
  func.func @transform_7(%arg0: i32) -> (i32, i32) {
    %c0_i32 = arith.constant 0 : i32
    %c0_i32_0 = arith.constant 0 : i32
    return %arg0, %c0_i32 : i32, i32
  }
}

</mosaic_0001>

<bundles_post_ra>
// kernel: _fused_forward.1
= control target key start
LH: loop header
LB: loop body
LE: loop exit
PB: predicated region body
PF: predicated region fallthrough
CT: control target
= control target key end

     0   :  { %12 = vsyncpa [#allocation3], 0  ;;  %s934_s0 = inlined_call_operand.hbm [shape: f32[10,64], index: 0, kind: input, shape index: {}]   ;;  %s935_s1 = inlined_call_operand.hbm [shape: f32[64,128], index: 1, kind: input, shape index: {}]   ;;  %s936_s2 = inlined_call_operand.vmem [shape: f32[1,128], index: 2, kind: input, shape index: {}]   ;;  %s937_s3 = inlined_call_operand.hbm [shape: f32[128,128], index: 3, kind: input, shape index: {}]   ;;  %s938_s4 = inlined_call_operand.vmem [shape: f32[1,128], index: 4, kind: input, shape index: {}]   ;;  %s939_s5 = inlined_call_operand.hbm [shape: f32[128,128], index: 5, kind: input, shape index: {}]   ;;  %s940_s6 = inlined_call_operand.vmem [shape: f32[1,128], index: 6, kind: input, shape index: {}]   ;;  %s941_s7 = inlined_call_operand.hbm [shape: f32[10,128], index: 7, kind: output, shape index: {}]  }
   0x1   :  { %13 = vsyncpa [#allocation6], 0 }
   0x2   :  { %14 = vsyncpa [#allocation9], 0 }
   0x3   :  { %15 = vsyncpa [#allocation4], 0  ;;  %s787_s24 = smov [#allocation5]   ;;  %s788_s26 = smov [#allocation2]  }
   0x4   :  { %s33_s25 = sshll.u32 %s787_s24, 4  ;;  %s21_s27 = sshll.u32 %s788_s26, 4  ;;  %s34_s25 = int_to_ptr.vmem [resolvable:$true] %s33_s25  ;;  %s834_s27 = int_to_ptr.vmem [resolvable:$true] %s21_s27 }
   0x5   :  { %s669_s30 = scalar_lea.hbm %s935_s1, 1024 }
   0x6   :  { %p670_p0 = scmp.ne.s32.totalorder %s935_s1, %s669_s30  ;;  %p673_p1 = scmp.lt.u32.totalorder %s669_s30, %s935_s1 }
   0x8   :  { %p675_p2 = pnand %p673_p1, %p670_p0 }
   0xa   :  { %678 = shalt.err (!%p675_p2)
}
   0xb   :  { %s679_s12 = scalar_lea.vmem %s34_s25, 1024  ;;  %p684_p4 = scmp.lt.s32.totalorder %s34_s25, %s34_s25 }
   0xc   :  { %p680_p3 = scmp.ne.s32.totalorder %s34_s25, %s679_s12  ;;  %p685_p5 = scmp.lt.s32.totalorder %s679_s12, %s679_s12 }
   0xe   :  { %p686_p6 = por %p685_p5, %p684_p4 }
  0x10   :  { %p687_p7 = pnand %p686_p6, %p680_p3 }
  0x12   :  { %690 = shalt.err (!%p687_p7)
}
  0x13   :  { %s789_s13 = smov 128   ;;  %s790_s14 = smov 8  }
  0x14   :  { %39 = dma.hbm_to_vmem [thread:$0]  %s935_s1, 1024, %s34_s25, [#allocation6], %s789_s13, %s789_s13, %s790_s14  }
  0x15   :  { %s691_s19 = scalar_lea.hbm %s934_s0, 256 }
  0x16   :  { %p692_p8 = scmp.ne.s32.totalorder %s934_s0, %s691_s19  ;;  %p695_p9 = scmp.lt.u32.totalorder %s691_s19, %s934_s0 }
  0x18   :  { %p697_p10 = pnand %p695_p9, %p692_p8 }
  0x1a   :  { %700 = shalt.err (!%p697_p10)
}
  0x1b   :  { %s701_s24 = scalar_lea.vmem %s834_s27, 256  ;;  %p706_p12 = scmp.lt.s32.totalorder %s834_s27, %s834_s27 }
  0x1c   :  { %p702_p11 = scmp.ne.s32.totalorder %s834_s27, %s701_s24  ;;  %p707_p13 = scmp.lt.s32.totalorder %s701_s24, %s701_s24 }
  0x1e   :  { %p708_p0 = por %p707_p13, %p706_p12 }
  0x20   :  { %p709_p1 = pnand %p708_p0, %p702_p11 }
  0x22   :  { %712 = shalt.err (!%p709_p1)
}
  0x23   :  { %27 = dma.hbm_to_vmem [thread:$0]  %s934_s0, 256, %s834_s27, [#allocation3], %s789_s13, %s789_s13, %s790_s14  }
  0x24   :  { %s791_s26 = smov [#allocation7]   ;;  %s792_s29 = smov [#allocation8]  }
  0x25   :  { %s47_s28 = sshll.u32 %s791_s26, 4  ;;  %s61_s30 = sshll.u32 %s792_s29, 4  ;;  %s48_s28 = int_to_ptr.vmem [resolvable:$true] %s47_s28  ;;  %s871_s30 = int_to_ptr.vmem [resolvable:$true] %s61_s30 }
  0x26   :  { %s713_s10 = scalar_lea.hbm %s937_s3, 2048 }
  0x27   :  { %p714_p2 = scmp.ne.s32.totalorder %s937_s3, %s713_s10  ;;  %p717_p3 = scmp.lt.u32.totalorder %s713_s10, %s937_s3 }
  0x29   :  { %p719_p4 = pnand %p717_p3, %p714_p2 }
  0x2b   :  { %722 = shalt.err (!%p719_p4)
}
  0x2c   :  { %s723_s0 = scalar_lea.vmem %s48_s28, 2048  ;;  %p728_p6 = scmp.lt.s32.totalorder %s48_s28, %s48_s28 }
  0x2d   :  { %p724_p5 = scmp.ne.s32.totalorder %s48_s28, %s723_s0  ;;  %p729_p7 = scmp.lt.s32.totalorder %s723_s0, %s723_s0 }
  0x2f   :  { %p730_p8 = por %p729_p7, %p728_p6 }
  0x31   :  { %p731_p9 = pnand %p730_p8, %p724_p5 }
  0x33   :  { %734 = shalt.err (!%p731_p9)
}
  0x34   :  { %53 = dma.hbm_to_vmem [thread:$0]  %s937_s3, 2048, %s48_s28, [#allocation6], %s789_s13, %s789_s13, %s790_s14  }
  0x35   :  { %s735_s20 = scalar_lea.hbm %s939_s5, 2048 }
  0x36   :  { %p736_p10 = scmp.ne.s32.totalorder %s939_s5, %s735_s20  ;;  %p739_p11 = scmp.lt.u32.totalorder %s735_s20, %s939_s5 }
  0x38   :  { %p741_p12 = pnand %p739_p11, %p736_p10 }
  0x3a   :  { %744 = shalt.err (!%p741_p12)
}
  0x3b   :  { %s745_s1 = scalar_lea.vmem %s871_s30, 2048  ;;  %p750_p0 = scmp.lt.s32.totalorder %s871_s30, %s871_s30 }
  0x3c   :  { %p746_p13 = scmp.ne.s32.totalorder %s871_s30, %s745_s1  ;;  %p751_p1 = scmp.lt.s32.totalorder %s745_s1, %s745_s1 }
  0x3e   :  { %p752_p2 = por %p751_p1, %p750_p0 }
  0x40   :  { %p753_p3 = pnand %p752_p2, %p746_p13 }
  0x42   :  { %756 = shalt.err (!%p753_p3)
}
  0x43   :  { %67 = dma.hbm_to_vmem [thread:$0]  %s939_s5, 2048, %s871_s30, [#allocation9], %s789_s13, %s789_s13, %s790_s14  }
  0x44   :  { %779 = dma.done.wait [#allocation3], 256  }
  0x45   :  { %780 = vsyncadd [#allocation3], 4294967040 }
  0x46   :  { %781 = dma.done.wait [#allocation6], 3072  }
  0x47   :  { %782 = vsyncadd [#allocation6], 4294964224 }
  0x48   :  { %783 = dma.done.wait [#allocation9], 2048  }
  0x49   :  { %784 = vsyncadd [#allocation9], 4294965248  ;;  %v84_v0 = vld [vmem:[#allocation5] sm:$0xff]  ;;  %v85_v1 = vld [vmem:[#allocation5 + $0x8] sm:$0xff]  ;;  %vm99_vm0 = vcmask 523264   ;;  %s793_s30 = smov [#allocation10]  }
  0x4a   :  { %v86_v2 = vld [vmem:[#allocation5 + $0x10] sm:$0xff]  ;;  %v566_v3 = vpack.c.bf16 %v85_v1, %v84_v0  ;;  %v87_v4 = vld [vmem:[#allocation5 + $0x18] sm:$0xff]  ;;  %v88_v6 = vld [vmem:[#allocation5 + $0x20] sm:$0xff]  ;;  %s408_s8 = sshll.u32 %s793_s30, 4  ;;  %s409_s8 = int_to_ptr.vmem [resolvable:$true] %s408_s8 }
  0x4b   :  { %v570_v5 = vpack.c.bf16 %v87_v4, %v86_v2  ;;  %v89_v7 = vld [vmem:[#allocation5 + $0x28] sm:$0xff]  ;;  %v82_v8 = vld [vmem:[#allocation2] sm:$0xff]  ;;  %v193_v9 = vld [vmem:[#allocation7] sm:$0xff]  ;;  %s757_s9 = scalar_lea.vmem %s409_s8, 256  ;;  %p762_p5 = scmp.lt.s32.totalorder %s409_s8, %s409_s8 }
  0x4c   :  { %567 = vmatprep.subr.bf16.mxu0 %v566_v3  ;;  %493 = vmatprep.mubr.msk.f32.mxu0 %vm99_vm0, %v82_v8  ;;  %v194_v10 = vld [vmem:[#allocation7 + $0x8] sm:$0xff]  ;;  %v574_v12 = vpack.c.bf16 %v89_v7, %v88_v6  ;;  %v90_v13 = vld [vmem:[#allocation5 + $0x30] sm:$0xff]  ;;  %v91_v14 = vld [vmem:[#allocation5 + $0x38] sm:$0xff]  ;;  %p758_p4 = scmp.ne.s32.totalorder %s409_s8, %s757_s9  ;;  %p763_p6 = scmp.lt.s32.totalorder %s757_s9, %s757_s9 }
  0x4d   :  { %569 = vmatpush3.bf16.msra.mxu0 %v566_v3  ;;  %v582_v11 = vpack.c.bf16 %v194_v10, %v193_v9  ;;  %v578_v15 = vpack.c.bf16 %v91_v14, %v90_v13  ;;  %v83_v16 = vld [vmem:[#allocation2 + $0x8] sm:$0xff]  ;;  %v195_v17 = vld [vmem:[#allocation7 + $0x10] sm:$0xff]  ;;  %v197_v20 = vld [vmem:[#allocation7 + $0x20] sm:$0xff] }
  0x4e   :  { %571 = vmatprep.subr.bf16.mxu0 %v570_v5  ;;  %v196_v18 = vld [vmem:[#allocation7 + $0x18] sm:$0xff]  ;;  %v198_v21 = vld [vmem:[#allocation7 + $0x28] sm:$0xff]  ;;  %v199_v23 = vld [vmem:[#allocation7 + $0x30] sm:$0xff]  ;;  %p764_p7 = por %p763_p6, %p762_p5 }
  0x4f   :  { %583 = vmatprep.subr.bf16.mxu1 %v582_v11  ;;  %v586_v19 = vpack.c.bf16 %v196_v18, %v195_v17  ;;  %v590_v22 = vpack.c.bf16 %v198_v21, %v197_v20  ;;  %v200_v24 = vld [vmem:[#allocation7 + $0x38] sm:$0xff]  ;;  %v201_v26 = vld [vmem:[#allocation7 + $0x40] sm:$0xff]  ;;  %v202_v27 = vld [vmem:[#allocation7 + $0x48] sm:$0xff] }
  0x50   :  { %585 = vmatpush3.bf16.msra.mxu1 %v582_v11  ;;  %v594_v25 = vpack.c.bf16 %v200_v24, %v199_v23  ;;  %v598_v28 = vpack.c.bf16 %v202_v27, %v201_v26  ;;  %v203_v29 = vld [vmem:[#allocation7 + $0x50] sm:$0xff]  ;;  %v204_v30 = vld [vmem:[#allocation7 + $0x58] sm:$0xff]  ;;  %v205_v32 = vld [vmem:[#allocation7 + $0x60] sm:$0xff]  ;;  %p765_p8 = pnand %p764_p7, %p758_p4 }
  0x51   :  { %573 = vmatpush3.bf16.msra.mxu0 %v570_v5  ;;  %587 = vmatprep.subr.bf16.mxu1 %v586_v19  ;;  %v602_v31 = vpack.c.bf16 %v204_v30, %v203_v29  ;;  %v206_v33 = vld [vmem:[#allocation7 + $0x68] sm:$0xff]  ;;  %v207_v34 = vld [vmem:[#allocation7 + $0x70] sm:$0xff]  ;;  %v208_v36 = vld [vmem:[#allocation7 + $0x78] sm:$0xff] }
  0x52   :  { %575 = vmatprep.subr.bf16.mxu0 %v574_v12  ;;  %v606_v35 = vpack.c.bf16 %v206_v33, %v205_v32  ;;  %v610_v37 = vpack.c.bf16 %v208_v36, %v207_v34  ;;  %v303_v38 = vld [vmem:[#allocation8] sm:$0xff]  ;;  %v304_v39 = vld [vmem:[#allocation8 + $0x8] sm:$0xff]  ;;  %v422_v41 = vld [vmem:[%s936_s2] ss:$0 sm:$0xff] }
  0x53   :  { %v614_v40 = vpack.c.bf16 %v304_v39, %v303_v38  ;;  %v305_v54 = vld [vmem:[#allocation8 + $0x10] sm:$0xff]  ;;  %v306_v55 = vld [vmem:[#allocation8 + $0x18] sm:$0xff]  ;;  %v307_v57 = vld [vmem:[#allocation8 + $0x20] sm:$0xff] }
  0x54   :  { %589 = vmatpush3.bf16.msra.mxu1 %v586_v19  ;;  %v618_v56 = vpack.c.bf16 %v306_v55, %v305_v54  ;;  %v308_v58 = vld [vmem:[#allocation8 + $0x28] sm:$0xff]  ;;  %v309_v60 = vld [vmem:[#allocation8 + $0x30] sm:$0xff]  ;;  %v310_v61 = vld [vmem:[#allocation8 + $0x38] sm:$0xff] }
  0x55   :  { %577 = vmatpush3.bf16.msra.mxu0 %v574_v12  ;;  %591 = vmatprep.subr.bf16.mxu1 %v590_v22  ;;  %v622_v59 = vpack.c.bf16 %v308_v58, %v307_v57  ;;  %v626_v62 = vpack.c.bf16 %v310_v61, %v309_v60  ;;  %v311_v63 = vld [vmem:[#allocation8 + $0x40] sm:$0xff]  ;;  %v312_v0 = vld [vmem:[#allocation8 + $0x48] sm:$0xff]  ;;  %v313_v2 = vld [vmem:[#allocation8 + $0x50] sm:$0xff] }
  0x56   :  { %579 = vmatprep.subr.bf16.mxu0 %v578_v15  ;;  %v630_v1 = vpack.c.bf16 %v312_v0, %v311_v63  ;;  %v314_v3 = vld [vmem:[#allocation8 + $0x58] sm:$0xff]  ;;  %v315_v5 = vld [vmem:[#allocation8 + $0x60] sm:$0xff]  ;;  %v316_v6 = vld [vmem:[#allocation8 + $0x68] sm:$0xff] }
  0x57   :  { %v634_v4 = vpack.c.bf16 %v314_v3, %v313_v2  ;;  %v317_v7 = vld [vmem:[#allocation8 + $0x70] sm:$0xff]  ;;  %v638_v8 = vpack.c.bf16 %v316_v6, %v315_v5  ;;  %v318_v9 = vld [vmem:[#allocation8 + $0x78] sm:$0xff] }
  0x58   :  { %593 = vmatpush3.bf16.msra.mxu1 %v590_v22  ;;  %v642_v10 = vpack.c.bf16 %v318_v9, %v317_v7  ;;  %v427_v11 = vld [vmem:[%s938_s4] ss:$0 sm:$0xff] }
  0x59   :  { %581 = vmatpush3.bf16.msra.mxu0 %v578_v15  ;;  %595 = vmatprep.subr.bf16.mxu1 %v594_v25  ;;  %v430_v24 = vld [vmem:[%s940_s6] ss:$0 sm:$0xff] }
  0x5a   :  { %615 = vmatprep.subr.bf16.mxu0 %v614_v40 }
  0x5c   :  { %494 = vmatmul.mubr.msk.f32.vlgmr.msra.gmra.mrb[0].mxu0 %vm99_vm0, %v83_v16  ;;  %597 = vmatpush3.bf16.msra.mxu1 %v594_v25 }
  0x5d   :  { %599 = vmatprep.subr.bf16.mxu1 %v598_v28  ;;  %617 = vmatpush3.bf16.msra.mxu0 %v614_v40 }
  0x5e   :  { %619 = vmatprep.subr.bf16.mxu0 %v618_v56 }
  0x60   :  { %601 = vmatpush3.bf16.msra.mxu1 %v598_v28 }
  0x61   :  { %603 = vmatprep.subr.bf16.mxu1 %v602_v31  ;;  %621 = vmatpush3.bf16.msra.mxu0 %v618_v56 }
  0x62   :  { %623 = vmatprep.subr.bf16.mxu0 %v622_v59 }
  0x64   :  { %605 = vmatpush3.bf16.msra.mxu1 %v602_v31 }
  0x65   :  { %607 = vmatprep.subr.bf16.mxu1 %v606_v35  ;;  %625 = vmatpush3.bf16.msra.mxu0 %v622_v59 }
  0x66   :  { %627 = vmatprep.subr.bf16.mxu0 %v626_v62 }
  0x68   :  { %609 = vmatpush3.bf16.msra.mxu1 %v606_v35 }
  0x69   :  { %611 = vmatprep.subr.bf16.mxu1 %v610_v37  ;;  %629 = vmatpush3.bf16.msra.mxu0 %v626_v62 }
  0x6a   :  { %631 = vmatprep.subr.bf16.mxu0 %v630_v1 }
  0x6c   :  { %613 = vmatpush3.bf16.msra.mxu1 %v610_v37 }
  0x6d   :  { %633 = vmatpush3.bf16.msra.mxu0 %v630_v1 }
  0x6e   :  { %635 = vmatprep.subr.bf16.mxu0 %v634_v4 }
  0x71   :  { %637 = vmatpush3.bf16.msra.mxu0 %v634_v4 }
  0x72   :  { %639 = vmatprep.subr.bf16.mxu0 %v638_v8 }
  0x75   :  { %641 = vmatpush3.bf16.msra.mxu0 %v638_v8 }
  0x76   :  { %643 = vmatprep.subr.bf16.mxu0 %v642_v10 }
  0x79   :  { %645 = vmatpush3.bf16.msra.mxu0 %v642_v10 }
 0x12f   :  { %v495_v42 = vpop.f32.mrb[0].mxu0 }
 0x130   :  { %v178_v43 = vadd.f32 %v495_v42, %v422_v41  ;;  %v172_v44 = vpop.f32.mrb[1].mxu0 }
 0x131   :  { %v173_v45 = vadd.f32 %v422_v41, %v172_v44 }
 0x132   :  { %v426_v46 = vmul.f32 -1.442695, %v178_v43 }
 0x133   :  { %v425_v47 = vmul.f32 -1.442695, %v173_v45 }
 0x134   :  { %653 = vpow2.f32 %v426_v46 }
 0x135   :  { %655 = vpow2.f32 %v425_v47 }
 0x13e   :  { %v654_v48 = vpop.eup %653 }
 0x13f   :  { %v656_v49 = vpop.eup %655  ;;  %v188_v50 = vadd.f32 1.0, %v654_v48 }
 0x140   :  { %v187_v51 = vadd.f32 1.0, %v656_v49 }
 0x142   :  { %657 = vrcp.f32 %v187_v51 }
 0x143   :  { %659 = vrcp.f32 %v188_v50 }
 0x14c   :  { %v658_v52 = vpop.eup %657 }
 0x14d   :  { %v660_v53 = vpop.eup %659  ;;  %528 = vmatprep.mubr.f32.mxu1 %v658_v52 }
 0x14e   :  { %529 = vmatmul.mubr.f32.vlgmr.msra.gmra.mrb[0].mxu1 %v660_v53 }
 0x221   :  { %v530_v12 = vpop.f32.mrb[0].mxu1 }
 0x222   :  { %v288_v13 = vadd.f32 %v530_v12, %v427_v11  ;;  %v282_v14 = vpop.f32.mrb[1].mxu1 }
 0x223   :  { %v283_v15 = vadd.f32 %v427_v11, %v282_v14 }
 0x224   :  { %v429_v16 = vmul.f32 -1.442695, %v288_v13 }
 0x225   :  { %v428_v17 = vmul.f32 -1.442695, %v283_v15 }
 0x226   :  { %661 = vpow2.f32 %v429_v16 }
 0x227   :  { %663 = vpow2.f32 %v428_v17 }
 0x230   :  { %v662_v18 = vpop.eup %661 }
 0x231   :  { %v664_v19 = vpop.eup %663  ;;  %v298_v20 = vadd.f32 1.0, %v662_v18 }
 0x232   :  { %v297_v21 = vadd.f32 1.0, %v664_v19 }
 0x234   :  { %665 = vrcp.f32 %v297_v21 }
 0x235   :  { %667 = vrcp.f32 %v298_v20 }
 0x23e   :  { %v666_v22 = vpop.eup %665 }
 0x23f   :  { %v668_v23 = vpop.eup %667  ;;  %563 = vmatprep.mubr.f32.mxu0 %v666_v22 }
 0x240   :  { %564 = vmatmul.mubr.f32.vlgmr.msra.gmra.mrb[2].mxu0 %v668_v23 }
 0x313   :  { %v565_v25 = vpop.f32.mrb[2].mxu0 }
 0x314   :  { %v398_v26 = vadd.f32 %v565_v25, %v430_v24  ;;  %v392_v27 = vpop.f32.mrb[3].mxu0 }
 0x315   :  { %v393_v28 = vadd.f32 %v430_v24, %v392_v27 }
 0x316   :  { %402 = vst [vmem:[#allocation10 + $0x8] sm:$0xff] %v398_v26 }
 0x317   :  { %401 = vst [vmem:[#allocation10] sm:$0xff] %v393_v28 }
 0x318   :  { %768 = shalt.err (!%p765_p8)
}
 0x319   :  { %s769_s6 = scalar_lea.hbm %s941_s7, 256 }
 0x31a   :  { %p770_p9 = scmp.ne.s32.totalorder %s941_s7, %s769_s6  ;;  %p773_p10 = scmp.lt.u32.totalorder %s769_s6, %s941_s7 }
 0x31c   :  { %p775_p11 = pnand %p773_p10, %p770_p9 }
 0x31e   :  { %778 = shalt.err (!%p775_p11)
}
 0x31f   :  { %414 = dma.vmem_to_hbm [thread:$0]  %s409_s8, 256, %s941_s7, [#allocation4], %s789_s13, %s789_s13, %s790_s14  }
 0x320   :  { %785 = dma.done.wait [#allocation4], 256  }
 0x321   :  { %786 = vsyncadd [#allocation4], 4294967040 }
 0x322   :  { %418 = vsyncpa [#allocation3], 1 }
 0x323   :  { %419 = vsyncpa [#allocation6], 1 }
 0x324   :  { %420 = vsyncpa [#allocation9], 1 }
 0x325   :  { %421 = vsyncpa [#allocation4], 1 }

</bundles_post_ra>
